<compile_context>
chip_gen: v5e
topology: v5e:2x2
jax: 0.10.0
libtpu: 0.0.40
codegen_flags: <defaults>
</compile_context>

<pallas_src>
import numpy as np
import jax
import jax.numpy as jnp
from jax.experimental import pallas as pl
from jax.experimental.pallas import tpu as pltpu

# ---- AudioPipeline default hyper-parameters ----
SAMPLE_RATE = 24000
FFT_SIZE = 512
HOP_SIZE = 128
WIN_LENGTH = 512
NUM_MELS = 80
FMIN = 30
FMAX = 12000
EPS = 1e-6
N_BINS = FFT_SIZE // 2 + 1          # 257
N_BINS_USED = 256                   # Nyquist bin dropped (zero mel weight, asserted below)
NUM_MELS_PAD = 128                  # 80 -> 128 (lane-dense stores)
FRAMES_PER_FFT = FFT_SIZE // HOP_SIZE   # 4
EXTRA_ROWS = 16                     # overlap rows fetched from the next tile
TILE_F_MAX = 512                    # max frames per grid step


# -------------------------------------------------------------------------
# Deterministic parameter construction (replicates librosa.filters.mel and
# the periodic Hann window used by librosa.stft). No checkpoints loaded.
# -------------------------------------------------------------------------
def _hz_to_mel(freqs):
    freqs = np.asarray(freqs, dtype=np.float64)
    f_sp = 200.0 / 3.0
    mels = freqs / f_sp
    min_log_hz = 1000.0
    min_log_mel = min_log_hz / f_sp
    logstep = np.log(6.4) / 27.0
    return np.where(freqs >= min_log_hz,
                    min_log_mel + np.log(np.maximum(freqs, 1e-10) / min_log_hz) / logstep,
                    mels)


def _mel_to_hz(mels):
    mels = np.asarray(mels, dtype=np.float64)
    f_sp = 200.0 / 3.0
    freqs = f_sp * mels
    min_log_hz = 1000.0
    min_log_mel = min_log_hz / f_sp
    logstep = np.log(6.4) / 27.0
    return np.where(mels >= min_log_mel,
                    min_log_hz * np.exp(logstep * (mels - min_log_mel)),
                    freqs)


def mel_filterbank(sr, n_fft, n_mels, fmin, fmax):
    """librosa.filters.mel with htk=False, norm='slaney'."""
    fftfreqs = np.linspace(0.0, sr / 2.0, 1 + n_fft // 2)
    mel_f = _mel_to_hz(np.linspace(_hz_to_mel(fmin), _hz_to_mel(fmax), n_mels + 2))
    fdiff = np.diff(mel_f)
    ramps = mel_f[:, None] - fftfreqs[None, :]
    weights = np.zeros((n_mels, 1 + n_fft // 2), dtype=np.float64)
    for i in range(n_mels):
        lower = -ramps[i] / fdiff[i]
        upper = ramps[i + 2] / fdiff[i + 1]
        weights[i] = np.maximum(0.0, np.minimum(lower, upper))
    enorm = 2.0 / (mel_f[2:n_mels + 2] - mel_f[:n_mels])
    weights *= enorm[:, None]
    return weights.astype(np.float32)


def dft_matrices(n_fft, win_length, n_bins):
    """Real/imag DFT matrices with the periodic Hann window folded in."""
    win = 0.5 - 0.5 * np.cos(2.0 * np.pi * np.arange(win_length) / win_length)
    n = np.arange(n_fft)[:, None]
    k = np.arange(n_bins)[None, :]
    ang = 2.0 * np.pi * n * k / n_fft
    cos_m = (win[:, None] * np.cos(ang)).astype(np.float32)
    sin_m = (-win[:, None] * np.sin(ang)).astype(np.float32)
    return cos_m, sin_m


_COS_NP, _SIN_NP = dft_matrices(FFT_SIZE, WIN_LENGTH, N_BINS)           # (512, 257) each
_MELB_NP = mel_filterbank(SAMPLE_RATE, FFT_SIZE, NUM_MELS, FMIN, FMAX)  # (80, 257)

# With fmax == sr/2 and slaney triangles the Nyquist-bin column is (numerically) zero,
# so bin 256 never contributes; verify before dropping it from the fused matrices.
assert float(np.max(np.abs(_MELB_NP[:, N_BINS - 1]))) < 1e-6

# Fused cos|sin DFT matrix (512, 512) and mel projection (256, 128), bf16 operands.
_W_NP = np.zeros((FFT_SIZE, 2 * N_BINS_USED), dtype=np.float32)
_W_NP[:, :N_BINS_USED] = _COS_NP[:, :N_BINS_USED]
_W_NP[:, N_BINS_USED:] = _SIN_NP[:, :N_BINS_USED]
W_FUSED = jnp.asarray(_W_NP, dtype=jnp.bfloat16)                        # (512, 512)

_MELT_NP = np.zeros((N_BINS_USED, NUM_MELS_PAD), dtype=np.float32)
_MELT_NP[:, :NUM_MELS] = _MELB_NP[:, :N_BINS_USED].T
MEL_T = jnp.asarray(_MELT_NP, dtype=jnp.bfloat16)                       # (256, 128)


# -------------------------------------------------------------------------
# Pallas kernel: in-VMEM framing + fused windowed-DFT magnitude + mel + log10,
# emitting the mel tile already transposed (num_mels_pad, tile_f).
# -------------------------------------------------------------------------
def mel_kernel(rows_ref, extra_ref, w_ref, melT_ref, out_ref):
    tile_f = rows_ref.shape[0]
    # Frame f = rows[f] ++ rows[f+1] ++ rows[f+2] ++ rows[f+3]; the 3-row tail of
    # the last frames comes from the 16-row overlap block of the next tile.
    allr = jnp.concatenate([rows_ref[...], extra_ref[...]], axis=0)      # (tile_f+16, 128) f32
    frames = jnp.concatenate(
        [allr[k:k + tile_f, :] for k in range(FRAMES_PER_FFT)], axis=1)  # (tile_f, 512) f32
    # One fused MXU stream for cos and sin projections.
    proj = jnp.dot(frames.astype(jnp.bfloat16), w_ref[...],
                   preferred_element_type=jnp.float32)                   # (tile_f, 512)
    re = proj[:, :N_BINS_USED]
    im = proj[:, N_BINS_USED:]
    spc = jnp.sqrt(re * re + im * im)                                    # |STFT|, f32 on VPU
    mel = jnp.dot(spc.astype(jnp.bfloat16), melT_ref[...],
                  preferred_element_type=jnp.float32)                    # (tile_f, 128)
    # Transpose in-kernel (XLU is idle here) -> lane-dense (128, tile_f) store.
    out_ref[...] = jnp.log10(jnp.maximum(EPS, mel)).T


def _round_up(x, m):
    return ((x + m - 1) // m) * m


def _choose_tile(n_frames):
    nf = _round_up(n_frames, 16)
    if nf <= 256:
        return nf                                   # single grid step for short clips
    # >= 2 grid steps (keeps both v7x TensorCores busy); 128-aligned so the
    # transposed output block stays lane-dense; capped at TILE_F_MAX.
    return int(min(TILE_F_MAX, _round_up((n_frames + 1) // 2, 128)))


def audio_pipeline(waveform):
    """waveform: (N,) float32 -> (padded_waveform, mel) matching the PyTorch module."""
    waveform = waveform.astype(jnp.float32)
    N = int(waveform.shape[0])
    n_frames = 1 + N // HOP_SIZE                    # librosa.stft with center=True

    tile_f = _choose_tile(n_frames)
    n_steps = (n_frames + tile_f - 1) // tile_f
    n_frames_p = n_steps * tile_f
    n_rows = n_frames_p + EXTRA_ROWS                # rows covering the last tile's overlap

    # librosa.stft center padding (pad_mode='constant' => zeros) + alignment padding.
    # Framing itself happens inside the kernel - no XLA gather / concat / frame buffer.
    padded = jnp.pad(waveform,
                     (FFT_SIZE // 2, n_rows * HOP_SIZE - N - FFT_SIZE // 2))
    rows = padded.reshape(n_rows, HOP_SIZE)         # (n_rows, 128) f32

    cost = pl.CostEstimate(
        flops=2 * n_frames_p * (FFT_SIZE * 2 * N_BINS_USED + N_BINS_USED * NUM_MELS_PAD),
        transcendentals=n_frames_p * (N_BINS_USED + NUM_MELS_PAD),
        bytes_accessed=rows.size * 4 + W_FUSED.size * 2 + MEL_T.size * 2
                       + n_frames_p * NUM_MELS_PAD * 4)

    mel_full = pl.pallas_call(
        mel_kernel,
        out_shape=jax.ShapeDtypeStruct((NUM_MELS_PAD, n_frames_p), jnp.float32),
        grid=(n_steps,),
        in_specs=[
            # main row block of this tile
            pl.BlockSpec((tile_f, HOP_SIZE), lambda i: (i, 0)),
            # 16-row overlap block starting right after this tile's rows
            pl.BlockSpec((EXTRA_ROWS, HOP_SIZE),
                         lambda i: ((i + 1) * (tile_f // EXTRA_ROWS), 0)),
            # grid-invariant weights (fetched once by the pipeline)
            pl.BlockSpec((FFT_SIZE, 2 * N_BINS_USED), lambda i: (0, 0)),
            pl.BlockSpec((N_BINS_USED, NUM_MELS_PAD), lambda i: (0, 0)),
        ],
        out_specs=pl.BlockSpec((NUM_MELS_PAD, tile_f), lambda i: (0, i)),
        compiler_params=pltpu.CompilerParams(dimension_semantics=("parallel",)),
        cost_estimate=cost,
    )(rows, rows, W_FUSED, MEL_T)

    mel = mel_full[:NUM_MELS, :n_frames]            # (num_mels, n_frames), no XLA transpose

    # librosa_pad_lr(pad_sides=1) -> right pad, then truncate to n_frames * hop.
    r_pad = (N // HOP_SIZE + 1) * HOP_SIZE - N
    wav_out = jnp.pad(waveform, (0, r_pad))[: n_frames * HOP_SIZE]
    return wav_out, mel


# -------------------------------------------------------------------------
# Pure-numpy f32 reference (gather framing + unfused full-257-bin DFT).
# -------------------------------------------------------------------------
def reference_mel(wav_np):
    wav_np = np.asarray(wav_np, dtype=np.float32)
    n_frames = 1 + wav_np.shape[0] // HOP_SIZE
    padded = np.pad(wav_np, (FFT_SIZE // 2, FFT_SIZE // 2))
    idx = (np.arange(n_frames, dtype=np.int32)[:, None] * HOP_SIZE
           + np.arange(FFT_SIZE, dtype=np.int32)[None, :])
    frames = padded[idx]                                              # (F, 512)
    re = frames @ _COS_NP
    im = frames @ _SIN_NP
    spc = np.sqrt(re * re + im * im)
    mel = spc @ _MELB_NP.T
    return np.log10(np.maximum(EPS, mel)).T                           # (80, F)


if __name__ == "__main__":
    key = jax.random.PRNGKey(0)
    k1, k2 = jax.random.split(key)

    # Small waveform (8 hops => 9 mel frames): exercises the single-step 16-frame tile.
    wav_small = jax.random.normal(k1, (1024,), dtype=jnp.float32)
    wav_out_s, mel_s = audio_pipeline(wav_small)
    jax.block_until_ready(wav_out_s)
    jax.block_until_ready(mel_s)
    assert wav_out_s.shape == (9 * HOP_SIZE,), wav_out_s.shape
    assert mel_s.shape == (NUM_MELS, 9), mel_s.shape
    assert bool(jnp.all(jnp.isfinite(mel_s)))
    ref_s = reference_mel(np.asarray(wav_small))
    assert float(np.max(np.abs(np.asarray(mel_s) - ref_s))) < 1e-1

    # Longer waveform (321 frames): exercises tile_f=256 with a 2-step parallel grid.
    wav_long = jax.random.normal(k2, (40960,), dtype=jnp.float32)
    wav_out_l, mel_l = audio_pipeline(wav_long)
    jax.block_until_ready(wav_out_l)
    jax.block_until_ready(mel_l)
    n_frames_l = 1 + 40960 // HOP_SIZE
    assert wav_out_l.shape == (n_frames_l * HOP_SIZE,), wav_out_l.shape
    assert mel_l.shape == (NUM_MELS, n_frames_l), mel_l.shape
    assert bool(jnp.all(jnp.isfinite(mel_l)))
    ref_l = reference_mel(np.asarray(wav_long))
    assert float(np.max(np.abs(np.asarray(mel_l) - ref_l))) < 1e-1

    print("KERNEL_OK")
</pallas_src>

<mosaic_0001>
module attributes {stable_mosaic.version = 11 : i64} {
  func.func @mel_kernel(%arg0: i32, %arg1: memref<16x128xf32, #tpu.memory_space<vmem>>, %arg2: memref<16x128xf32, #tpu.memory_space<vmem>>, %arg3: memref<512x512xbf16, #tpu.memory_space<vmem>>, %arg4: memref<256x128xbf16, #tpu.memory_space<vmem>>, %arg5: memref<128x16xf32, #tpu.memory_space<vmem>>) attributes {dimension_semantics = [#tpu.dimension_semantics<parallel>], iteration_bounds = array<i64: 1>, scalar_prefetch = 0 : i64, scratch_operands = 0 : i64, tpu.core_type = #tpu.core_type<tc>, window_params = [{transform_indices = @transform_0, window_bounds = array<i64: 16, 128>}, {transform_indices = @transform_1, window_bounds = array<i64: 16, 128>}, {pipeline_mode = #tpu.pipeline_mode<synchronous>, transform_indices = @transform_2, window_bounds = array<i64: 512, 512>}, {pipeline_mode = #tpu.pipeline_mode<synchronous>, transform_indices = @transform_3, window_bounds = array<i64: 256, 128>}, {transform_indices = @transform_4, window_bounds = array<i64: 128, 16>}]} {
    %c0 = arith.constant 0 : index
    %c0_0 = arith.constant 0 : index
    %0 = vector.load %arg1[%c0, %c0_0] : memref<16x128xf32, #tpu.memory_space<vmem>>, vector<16x128xf32>
    %c0_1 = arith.constant 0 : index
    %c0_2 = arith.constant 0 : index
    %1 = vector.load %arg2[%c0_1, %c0_2] : memref<16x128xf32, #tpu.memory_space<vmem>>, vector<16x128xf32>
    %2 = tpu.concatenate %0, %1 in 0 : vector<16x128xf32>, vector<16x128xf32> -> vector<32x128xf32>
    %3 = vector.extract_strided_slice %2 {offsets = [0, 0], sizes = [16, 128], strides = [1, 1]} : vector<32x128xf32> to vector<16x128xf32>
    %4 = vector.extract_strided_slice %2 {offsets = [1, 0], sizes = [16, 128], strides = [1, 1]} : vector<32x128xf32> to vector<16x128xf32>
    %5 = vector.extract_strided_slice %2 {offsets = [2, 0], sizes = [16, 128], strides = [1, 1]} : vector<32x128xf32> to vector<16x128xf32>
    %6 = vector.extract_strided_slice %2 {offsets = [3, 0], sizes = [16, 128], strides = [1, 1]} : vector<32x128xf32> to vector<16x128xf32>
    %7 = tpu.concatenate %3, %4, %5, %6 in 1 : vector<16x128xf32>, vector<16x128xf32>, vector<16x128xf32>, vector<16x128xf32> -> vector<16x512xf32>
    %8 = arith.truncf %7 : vector<16x512xf32> to vector<16x512xbf16>
    %c0_3 = arith.constant 0 : index
    %c0_4 = arith.constant 0 : index
    %9 = vector.load %arg3[%c0_3, %c0_4] : memref<512x512xbf16, #tpu.memory_space<vmem>>, vector<512x512xbf16>
    %cst = arith.constant dense<0.000000e+00> : vector<16x512xf32>
    %10 = tpu.matmul %8, %9, %cst {dimension_numbers = #tpu.dot_dimension_numbers<[1], [0], [0], [1], [0, 0, 1, 1], [], []>} : vector<16x512xbf16>, vector<512x512xbf16>, vector<16x512xf32> -> vector<16x512xf32>
    %11 = vector.extract_strided_slice %10 {offsets = [0, 0], sizes = [16, 256], strides = [1, 1]} : vector<16x512xf32> to vector<16x256xf32>
    %12 = vector.extract_strided_slice %10 {offsets = [0, 256], sizes = [16, 256], strides = [1, 1]} : vector<16x512xf32> to vector<16x256xf32>
    %13 = arith.mulf %11, %11 : vector<16x256xf32>
    %14 = arith.mulf %12, %12 : vector<16x256xf32>
    %15 = arith.addf %13, %14 : vector<16x256xf32>
    %16 = math.sqrt %15 : vector<16x256xf32>
    %17 = arith.truncf %16 : vector<16x256xf32> to vector<16x256xbf16>
    %c0_5 = arith.constant 0 : index
    %c0_6 = arith.constant 0 : index
    %18 = vector.load %arg4[%c0_5, %c0_6] : memref<256x128xbf16, #tpu.memory_space<vmem>>, vector<256x128xbf16>
    %cst_7 = arith.constant dense<0.000000e+00> : vector<16x128xf32>
    %19 = tpu.matmul %17, %18, %cst_7 {dimension_numbers = #tpu.dot_dimension_numbers<[1], [0], [0], [1], [0, 0, 1, 1], [], []>} : vector<16x256xbf16>, vector<256x128xbf16>, vector<16x128xf32> -> vector<16x128xf32>
    %cst_8 = arith.constant 9.99999997E-7 : f32
    %20 = vector.broadcast %cst_8 : f32 to vector<16x128xf32>
    %21 = arith.maximumf %20, %19 : vector<16x128xf32>
    %22 = math.log %21 : vector<16x128xf32>
    %cst_9 = arith.constant 0.434294492 : f32
    %23 = vector.broadcast %cst_9 : f32 to vector<16x128xf32>
    %24 = arith.mulf %22, %23 : vector<16x128xf32>
    %25 = tpu.transpose %24, [1, 0] : vector<16x128xf32> -> vector<128x16xf32>
    %c0_10 = arith.constant 0 : index
    %c0_11 = arith.constant 0 : index
    %26 = vector.load %arg5[%c0_10, %c0_11] : memref<128x16xf32, #tpu.memory_space<vmem>>, vector<128x16xf32>
    tpu.vector_store %arg5[%c0_10, %c0_11], %25 {strides = array<i32>} : memref<128x16xf32, #tpu.memory_space<vmem>>, vector<128x16xf32>,
    return
  }
  func.func @transform_0(%arg0: i32) -> (i32, i32) {
    %c0_i32 = arith.constant 0 : i32
    %c0_i32_0 = arith.constant 0 : i32
    return %arg0, %c0_i32 : i32, i32
  }
  func.func @transform_1(%arg0: i32) -> (i32, i32) {
    %c1_i32 = arith.constant 1 : i32
    %0 = arith.addi %arg0, %c1_i32 : i32
    %c1_i32_0 = arith.constant 1 : i32
    %1 = arith.muli %0, %c1_i32_0 : i32
    %c0_i32 = arith.constant 0 : i32
    %c0_i32_1 = arith.constant 0 : i32
    return %1, %c0_i32 : i32, i32
  }
  func.func @transform_2(%arg0: i32) -> (i32, i32) {
    %c0_i32 = arith.constant 0 : i32
    %c0_i32_0 = arith.constant 0 : i32
    %c0_i32_1 = arith.constant 0 : i32
    return %c0_i32, %c0_i32_0 : i32, i32
  }
  func.func @transform_3(%arg0: i32) -> (i32, i32) {
    %c0_i32 = arith.constant 0 : i32
    %c0_i32_0 = arith.constant 0 : i32
    %c0_i32_1 = arith.constant 0 : i32
    return %c0_i32, %c0_i32_0 : i32, i32
  }
  func.func @transform_4(%arg0: i32) -> (i32, i32) {
    %c0_i32 = arith.constant 0 : i32
    %c0_i32_0 = arith.constant 0 : i32
    return %c0_i32, %arg0 : i32, i32
  }
}

</mosaic_0001>

<bundles_post_ra>
// kernel: tpu_custom_call.1
= control target key start
LH: loop header
LB: loop body
LE: loop exit
PB: predicated region body
PF: predicated region fallthrough
CT: control target
= control target key end

     0   :  { %9 = vsyncpa [#allocation3], 0  ;;  %s2412_s0 = inlined_call_operand.hbm [shape: f32[32,128], index: 0, kind: input, shape index: {}]   ;;  %s2413_s1 = inlined_call_operand.hbm [shape: f32[32,128], index: 1, kind: input, shape index: {}]   ;;  %s2414_s2 = inlined_call_operand.hbm [shape: bf16[512,512], index: 2, kind: input, shape index: {}]   ;;  %s2415_s3 = inlined_call_operand.hbm [shape: bf16[256,128], index: 3, kind: input, shape index: {}]   ;;  %s2416_s4 = inlined_call_operand.vmem [shape: f32[128,16], index: 4, kind: output, shape index: {}]  }
   0x1   :  { %10 = vsyncpa [#allocation5], 0 }
   0x2   :  { %11 = vsyncpa [#allocation8], 0  ;;  %s1394_s17 = scalar_lea.hbm %s2413_s1, 16  ;;  %s2240_s19 = smov [#allocation4]  }
   0x3   :  { %s33_s18 = sshll.u32 %s1394_s17, 4  ;;  %s35_s20 = sshll.u32 %s2240_s19, 4  ;;  %s34_s18 = int_to_ptr.hbm [resolvable:$true] %s33_s18  ;;  %s36_s20 = int_to_ptr.vmem [resolvable:$true] %s35_s20 }
   0x4   :  { %s2241_s21 = smov 128   ;;  %s2242_s22 = smov 8  }
   0x5   :  { %41 = dma.hbm_to_vmem [thread:$0]  %s34_s18, 256, %s36_s20, [#allocation5], %s2241_s21, %s2241_s21, %s2242_s22  }
   0x6   :  { %s16_s25 = sshll.u32 %s2412_s0, 4  ;;  %s2243_s26 = smov [#allocation2]   ;;  %s17_s25 = int_to_ptr.hbm [resolvable:$true] %s16_s25 }
   0x7   :  { %s18_s27 = sshll.u32 %s2243_s26, 4  ;;  %s46_s1 = sshll.u32 %s2414_s2, 4  ;;  %s19_s27 = int_to_ptr.vmem [resolvable:$true] %s18_s27  ;;  %s47_s1 = int_to_ptr.hbm [resolvable:$true] %s46_s1 }
   0x8   :  { %24 = dma.hbm_to_vmem [thread:$0]  %s17_s25, 256, %s19_s27, [#allocation3], %s2241_s21, %s2241_s21, %s2242_s22  }
   0x9   :  { %s2244_s30 = smov [#allocation6]   ;;  %s2245_s6 = smov 256  }
   0xa   :  { %s48_s5 = sshll.u32 %s2244_s30, 4  ;;  %s2246_s7 = smov 16   ;;  %s49_s5 = int_to_ptr.vmem [resolvable:$true] %s48_s5 }
   0xb   :  { %54 = dma.hbm_to_vmem [thread:$0]  %s47_s1, 16384, %s49_s5, [#allocation5], %s2245_s6, %s2245_s6, %s2246_s7  }
   0xc   :  { %s59_s0 = sshll.u32 %s2415_s3, 4  ;;  %s2247_s10 = smov [#allocation7]   ;;  %s60_s0 = int_to_ptr.hbm [resolvable:$true] %s59_s0 }
   0xd   :  { %s61_s11 = sshll.u32 %s2247_s10, 4  ;;  %s2248_s12 = smov 64   ;;  %s62_s11 = int_to_ptr.vmem [resolvable:$true] %s61_s11 }
   0xe   :  { %s2249_s13 = smov 4  }
   0xf   :  { %67 = dma.hbm_to_vmem [thread:$0]  %s60_s0, 2048, %s62_s11, [#allocation8], %s2248_s12, %s2248_s12, %s2249_s13  }
  0x10   :  { %2234 = dma.done.wait [#allocation3], 256  }
  0x11   :  { %2235 = vsyncadd [#allocation3], 4294967040 }
  0x12   :  { %2236 = dma.done.wait [#allocation5], 16640  }
  0x13   :  { %2237 = vsyncadd [#allocation5], 4294950656 }
  0x14   :  { %2238 = dma.done.wait [#allocation8], 2048  }
  0x15   :  { %2239 = vsyncadd [#allocation8], 4294965248  ;;  %v1509_v0 = vld [vmem:[#allocation6 + $0xe0] sm:$0xf]  ;;  %v2001_v1 = vld [vmem:[#allocation6 + $0xec] sm:$0xf0] }
  0x16   :  { %v1637_v2 = vld [vmem:[#allocation6 + $0x1e0] sm:$0xf]  ;;  %v1510_v3 = vor.u32 %v2001_v1, %v1509_v0  ;;  %v2033_v4 = vld [vmem:[#allocation6 + $0x1ec] sm:$0xf0]  ;;  %vm100_vm0 = vcmask 1045504   ;;  %vm108_vm1 = vcmask 1044480  }
  0x17   :  { %v1765_v5 = vld [vmem:[#allocation6 + $0x2e0] sm:$0xf]  ;;  %v2065_v6 = vld [vmem:[#allocation6 + $0x2ec] sm:$0xf0]  ;;  %v1638_v7 = vor.u32 %v2033_v4, %v1637_v2  ;;  %vm92_vm2 = vcmask 1046528   ;;  %vm1370_vm11 = vcmask 130048  }
  0x18   :  { %v1766_v8 = vor.u32 %v2065_v6, %v1765_v5  ;;  %v1893_v9 = vld [vmem:[#allocation6 + $0x3e0] sm:$0xf]  ;;  %v2097_v10 = vld [vmem:[#allocation6 + $0x3ec] sm:$0xf0]  ;;  %888 = vmatpush.bf16.msra.mxu0 %v1510_v3 }
  0x19   :  { %v1493_v11 = vld [vmem:[#allocation6 + $0xc0] sm:$0xf]  ;;  %v1894_v12 = vor.u32 %v2097_v10, %v1893_v9  ;;  %v1997_v13 = vld [vmem:[#allocation6 + $0xcc] sm:$0xf0]  ;;  %902 = vmatpush.bf16.msra.mxu1 %v1638_v7 }
  0x1a   :  { %v1621_v14 = vld [vmem:[#allocation6 + $0x1c0] sm:$0xf]  ;;  %v2029_v15 = vld [vmem:[#allocation6 + $0x1cc] sm:$0xf0]  ;;  %916 = vmatpush.bf16.msra.mxu2 %v1766_v8  ;;  %v1494_v16 = vor.u32 %v1997_v13, %v1493_v11 }
  0x1b   :  { %v1622_v17 = vor.u32 %v2029_v15, %v1621_v14  ;;  %v1749_v18 = vld [vmem:[#allocation6 + $0x2c0] sm:$0xf]  ;;  %v2061_v19 = vld [vmem:[#allocation6 + $0x2cc] sm:$0xf0]  ;;  %930 = vmatpush.bf16.msra.mxu3 %v1894_v12 }
  0x1c   :  { %v1877_v20 = vld [vmem:[#allocation6 + $0x3c0] sm:$0xf]  ;;  %v1750_v21 = vor.u32 %v2061_v19, %v1749_v18  ;;  %v2093_v22 = vld [vmem:[#allocation6 + $0x3cc] sm:$0xf0]  ;;  %889 = vmatpush.bf16.msra.mxu0 %v1494_v16 }
  0x1d   :  { %v1477_v23 = vld [vmem:[#allocation6 + $0xa0] sm:$0xf]  ;;  %v1993_v24 = vld [vmem:[#allocation6 + $0xac] sm:$0xf0]  ;;  %v1878_v25 = vor.u32 %v2093_v22, %v1877_v20  ;;  %903 = vmatpush.bf16.msra.mxu1 %v1622_v17 }
  0x1e   :  { %v1605_v26 = vld [vmem:[#allocation6 + $0x1a0] sm:$0xf]  ;;  %v2025_v27 = vld [vmem:[#allocation6 + $0x1ac] sm:$0xf0]  ;;  %v1478_v29 = vor.u32 %v1993_v24, %v1477_v23  ;;  %917 = vmatpush.bf16.msra.mxu2 %v1750_v21 }
  0x1f   :  { %v1733_v28 = vld [vmem:[#allocation6 + $0x2a0] sm:$0xf]  ;;  %v2057_v30 = vld [vmem:[#allocation6 + $0x2ac] sm:$0xf0]  ;;  %v1606_v33 = vor.u32 %v2025_v27, %v1605_v26  ;;  %931 = vmatpush.bf16.msra.mxu3 %v1878_v25 }
  0x20   :  { %v1861_v31 = vld [vmem:[#allocation6 + $0x3a0] sm:$0xf]  ;;  %v2089_v32 = vld [vmem:[#allocation6 + $0x3ac] sm:$0xf0]  ;;  %v1734_v34 = vor.u32 %v2057_v30, %v1733_v28  ;;  %890 = vmatpush.bf16.msra.mxu0 %v1478_v29  ;;  %v1999_v28 = vld [vmem:[#allocation6 + $0xe4] sm:$0xf] }
  0x21   :  { %v1461_v35 = vld [vmem:[#allocation6 + $0x80] sm:$0xf]  ;;  %v1989_v36 = vld [vmem:[#allocation6 + $0x8c] sm:$0xf0]  ;;  %v1862_v38 = vor.u32 %v2089_v32, %v1861_v31  ;;  %904 = vmatpush.bf16.msra.mxu1 %v1606_v33  ;;  %v1511_v29 = vld [vmem:[#allocation6 + $0xf0] sm:$0xf0] }
  0x22   :  { %v1589_v37 = vld [vmem:[#allocation6 + $0x180] sm:$0xf]  ;;  %v2021_v39 = vld [vmem:[#allocation6 + $0x18c] sm:$0xf0]  ;;  %v1462_v44 = vor.u32 %v1989_v36, %v1461_v35  ;;  %918 = vmatpush.bf16.msra.mxu2 %v1734_v34  ;;  %v2031_v30 = vld [vmem:[#allocation6 + $0x1e4] sm:$0xf] }
  0x23   :  { %v1717_v40 = vld [vmem:[#allocation6 + $0x280] sm:$0xf]  ;;  %v2053_v41 = vld [vmem:[#allocation6 + $0x28c] sm:$0xf0]  ;;  %v1590_v45 = vor.u32 %v2021_v39, %v1589_v37  ;;  %932 = vmatpush.bf16.msra.mxu3 %v1862_v38  ;;  %v1639_v32 = vld [vmem:[#allocation6 + $0x1f0] sm:$0xf0] }
  0x24   :  { %v1845_v42 = vld [vmem:[#allocation6 + $0x380] sm:$0xf]  ;;  %v2085_v43 = vld [vmem:[#allocation6 + $0x38c] sm:$0xf0]  ;;  %v1718_v46 = vor.u32 %v2053_v41, %v1717_v40  ;;  %891 = vmatpush.bf16.msra.mxu0 %v1462_v44  ;;  %v2063_v33 = vld [vmem:[#allocation6 + $0x2e4] sm:$0xf]  ;;  %v1514_v40 = vor.u32 %v1999_v28, %v1511_v29 }
  0x25   :  { %v1445_v47 = vld [vmem:[#allocation6 + $0x60] sm:$0xf]  ;;  %v1985_v48 = vld [vmem:[#allocation6 + $0x6c] sm:$0xf0]  ;;  %v1846_v50 = vor.u32 %v2085_v43, %v1845_v42  ;;  %905 = vmatpush.bf16.msra.mxu1 %v1590_v45  ;;  %v1767_v34 = vld [vmem:[#allocation6 + $0x2f0] sm:$0xf0]  ;;  %v1642_v42 = vor.u32 %v2031_v30, %v1639_v32 }
  0x26   :  { %v1573_v49 = vld [vmem:[#allocation6 + $0x160] sm:$0xf]  ;;  %v2017_v51 = vld [vmem:[#allocation6 + $0x16c] sm:$0xf0]  ;;  %v1446_v56 = vor.u32 %v1985_v48, %v1445_v47  ;;  %919 = vmatpush.bf16.msra.mxu2 %v1718_v46  ;;  %v2095_v37 = vld [vmem:[#allocation6 + $0x3e4] sm:$0xf]  ;;  %v1770_v43 = vor.u32 %v2063_v33, %v1767_v34 }
  0x27   :  { %v1701_v52 = vld [vmem:[#allocation6 + $0x260] sm:$0xf]  ;;  %v2049_v53 = vld [vmem:[#allocation6 + $0x26c] sm:$0xf0]  ;;  %v1574_v57 = vor.u32 %v2017_v51, %v1573_v49  ;;  %933 = vmatpush.bf16.msra.mxu3 %v1846_v50  ;;  %v1895_v38 = vld [vmem:[#allocation6 + $0x3f0] sm:$0xf0] }
  0x28   :  { %v1829_v54 = vld [vmem:[#allocation6 + $0x360] sm:$0xf]  ;;  %v2081_v55 = vld [vmem:[#allocation6 + $0x36c] sm:$0xf0]  ;;  %v1702_v58 = vor.u32 %v2049_v53, %v1701_v52  ;;  %892 = vmatpush.bf16.msra.mxu0 %v1446_v56  ;;  %v1995_v41 = vld [vmem:[#allocation6 + $0xc4] sm:$0xf]  ;;  %v1898_v47 = vor.u32 %v2095_v37, %v1895_v38 }
  0x29   :  { %v1429_v59 = vld [vmem:[#allocation6 + $0x40] sm:$0xf]  ;;  %v1981_v60 = vld [vmem:[#allocation6 + $0x4c] sm:$0xf0]  ;;  %v1830_v62 = vor.u32 %v2081_v55, %v1829_v54  ;;  %906 = vmatpush.bf16.msra.mxu1 %v1574_v57  ;;  %v1495_v44 = vld [vmem:[#allocation6 + $0xd0] sm:$0xf0] }
  0x2a   :  { %v1557_v61 = vld [vmem:[#allocation6 + $0x140] sm:$0xf]  ;;  %v2013_v63 = vld [vmem:[#allocation6 + $0x14c] sm:$0xf0]  ;;  %v1430_v4 = vor.u32 %v1981_v60, %v1429_v59  ;;  %920 = vmatpush.bf16.msra.mxu2 %v1702_v58  ;;  %v2027_v45 = vld [vmem:[#allocation6 + $0x1c4] sm:$0xf]  ;;  %v1498_v54 = vor.u32 %v1995_v41, %v1495_v44 }
  0x2b   :  { %v1685_v0 = vld [vmem:[#allocation6 + $0x240] sm:$0xf]  ;;  %v2045_v1 = vld [vmem:[#allocation6 + $0x24c] sm:$0xf0]  ;;  %v1558_v5 = vor.u32 %v2013_v63, %v1557_v61  ;;  %934 = vmatpush.bf16.msra.mxu3 %v1830_v62  ;;  %v1623_v46 = vld [vmem:[#allocation6 + $0x1d0] sm:$0xf0] }
  0x2c   :  { %v1813_v2 = vld [vmem:[#allocation6 + $0x340] sm:$0xf]  ;;  %v2077_v3 = vld [vmem:[#allocation6 + $0x34c] sm:$0xf0]  ;;  %v1686_v6 = vor.u32 %v2045_v1, %v1685_v0  ;;  %893 = vmatpush.bf16.msra.mxu0 %v1430_v4  ;;  %v2059_v48 = vld [vmem:[#allocation6 + $0x2c4] sm:$0xf]  ;;  %v1626_v58 = vor.u32 %v2027_v45, %v1623_v46 }
  0x2d   :  { %v1413_v7 = vld [vmem:[#allocation6 + $0x20] sm:$0xf]  ;;  %v1977_v8 = vld [vmem:[#allocation6 + $0x2c] sm:$0xf0]  ;;  %v1814_v10 = vor.u32 %v2077_v3, %v1813_v2  ;;  %907 = vmatpush.bf16.msra.mxu1 %v1558_v5  ;;  %v1751_v49 = vld [vmem:[#allocation6 + $0x2d0] sm:$0xf0] }
  0x2e   :  { %v1541_v9 = vld [vmem:[#allocation6 + $0x120] sm:$0xf]  ;;  %v2009_v11 = vld [vmem:[#allocation6 + $0x12c] sm:$0xf0]  ;;  %v1414_v16 = vor.u32 %v1977_v8, %v1413_v7  ;;  %921 = vmatpush.bf16.msra.mxu2 %v1686_v6  ;;  %v2091_v50 = vld [vmem:[#allocation6 + $0x3c4] sm:$0xf]  ;;  %v1754_v59 = vor.u32 %v2059_v48, %v1751_v49 }
  0x2f   :  { %v1669_v12 = vld [vmem:[#allocation6 + $0x220] sm:$0xf]  ;;  %v2041_v13 = vld [vmem:[#allocation6 + $0x22c] sm:$0xf0]  ;;  %v1542_v19 = vor.u32 %v2009_v11, %v1541_v9  ;;  %935 = vmatpush.bf16.msra.mxu3 %v1814_v10  ;;  %v1879_v51 = vld [vmem:[#allocation6 + $0x3d0] sm:$0xf0] }
  0x30   :  { %v1797_v14 = vld [vmem:[#allocation6 + $0x320] sm:$0xf]  ;;  %v2073_v15 = vld [vmem:[#allocation6 + $0x32c] sm:$0xf0]  ;;  %v1670_v20 = vor.u32 %v2041_v13, %v1669_v12  ;;  %894 = vmatpush.bf16.msra.mxu0 %v1414_v16  ;;  %v1991_v52 = vld [vmem:[#allocation6 + $0xa4] sm:$0xf]  ;;  %v1882_v63 = vor.u32 %v2091_v50, %v1879_v51 }
  0x31   :  { %v1397_v17 = vld [vmem:[#allocation6] sm:$0xf]  ;;  %v1973_v18 = vld [vmem:[#allocation6 + $0xc] sm:$0xf0]  ;;  %v1798_v24 = vor.u32 %v2073_v15, %v1797_v14  ;;  %908 = vmatpush.bf16.msra.mxu1 %v1542_v19  ;;  %v1479_v53 = vld [vmem:[#allocation6 + $0xb0] sm:$0xf0] }
  0x32   :  { %v1525_v21 = vld [vmem:[#allocation6 + $0x100] sm:$0xf]  ;;  %v2005_v22 = vld [vmem:[#allocation6 + $0x10c] sm:$0xf0]  ;;  %v1398_v31 = vor.u32 %v1973_v18, %v1397_v17  ;;  %922 = vmatpush.bf16.msra.mxu2 %v1670_v20  ;;  %v2023_v55 = vld [vmem:[#allocation6 + $0x1a4] sm:$0xf]  ;;  %v1482_v1 = vor.u32 %v1991_v52, %v1479_v53 }
  0x33   :  { %v1653_v23 = vld [vmem:[#allocation6 + $0x200] sm:$0xf]  ;;  %v2037_v25 = vld [vmem:[#allocation6 + $0x20c] sm:$0xf0]  ;;  %v1526_v35 = vor.u32 %v2005_v22, %v1525_v21  ;;  %936 = vmatpush.bf16.msra.mxu3 %v1798_v24  ;;  %v1607_v56 = vld [vmem:[#allocation6 + $0x1b0] sm:$0xf0] }
  0x34   :  { %v1781_v26 = vld [vmem:[#allocation6 + $0x300] sm:$0xf]  ;;  %v2069_v27 = vld [vmem:[#allocation6 + $0x30c] sm:$0xf0]  ;;  %v1654_v36 = vor.u32 %v2037_v25, %v1653_v23  ;;  %895 = vmatpush.bf16.msra.mxu0 %v1398_v31  ;;  %v2055_v57 = vld [vmem:[#allocation6 + $0x2a4] sm:$0xf]  ;;  %v1610_v5 = vor.u32 %v2023_v55, %v1607_v56 }
  0x35   :  { %v1782_v39 = vor.u32 %v2069_v27, %v1781_v26  ;;  %909 = vmatpush.bf16.msra.mxu1 %v1526_v35  ;;  %v1735_v60 = vld [vmem:[#allocation6 + $0x2b0] sm:$0xf0]  ;;  %v2087_v61 = vld [vmem:[#allocation6 + $0x3a4] sm:$0xf]  ;;  %v87_v10 = vld [vmem:[#allocation2 + $0x8] sm:$0xff] }
  0x36   :  { %923 = vmatpush.bf16.msra.mxu2 %v1654_v36  ;;  %v1863_v62 = vld [vmem:[#allocation6 + $0x3b0] sm:$0xf0]  ;;  %v1987_v0 = vld [vmem:[#allocation6 + $0x84] sm:$0xf]  ;;  %v1738_v6 = vor.u32 %v2055_v57, %v1735_v60  ;;  %v102_v13 = vrot.slane %v87_v10, 2  ;;  %v110_v17 = vrot.slane %v87_v10, 3 }
  0x37   :  { %937 = vmatpush.bf16.msra.mxu3 %v1782_v39  ;;  %v1463_v2 = vld [vmem:[#allocation6 + $0x90] sm:$0xf0]  ;;  %v2019_v3 = vld [vmem:[#allocation6 + $0x184] sm:$0xf]  ;;  %v1866_v7 = vor.u32 %v2087_v61, %v1863_v62  ;;  %v94_v39 = vrot.slane %v87_v10, 1 }
  0x38   :  { %944 = vmatpush.bf16.msrb.mxu0 %v1514_v40  ;;  %v1591_v4 = vld [vmem:[#allocation6 + $0x190] sm:$0xf0]  ;;  %v2051_v8 = vld [vmem:[#allocation6 + $0x284] sm:$0xf]  ;;  %v1466_v20 = vor.u32 %v1987_v0, %v1463_v2 }
  0x39   :  { %958 = vmatpush.bf16.msrb.mxu1 %v1642_v42  ;;  %v86_v9 = vld [vmem:[#allocation2] sm:$0xff]  ;;  %v88_v11 = vld [vmem:[#allocation4] sm:$0xff]  ;;  %v1594_v24 = vor.u32 %v2019_v3, %v1591_v4 }
  0x3a   :  { %972 = vmatpush.bf16.msrb.mxu2 %v1770_v43  ;;  %v101_v12 = vrot.slane %v86_v9, 2  ;;  %v109_v14 = vrot.slane %v86_v9, 3  ;;  %v1719_v15 = vld [vmem:[#allocation6 + $0x290] sm:$0xf0]  ;;  %v104_v16 = vrot.slane %v88_v11, 2  ;;  %v112_v18 = vrot.slane %v88_v11, 3 }
  0x3b   :  { %986 = vmatpush.bf16.msrb.mxu3 %v1898_v47  ;;  %v2287_v19 = vpack.c.bf16 %v87_v10, %v86_v9  ;;  %v2083_v21 = vld [vmem:[#allocation6 + $0x384] sm:$0xf]  ;;  %v1847_v22 = vld [vmem:[#allocation6 + $0x390] sm:$0xf0]  ;;  %v1722_v31 = vor.u32 %v2051_v8, %v1719_v15  ;;  %v93_v38 = vrot.slane %v86_v9, 1  ;;  %v96_v40 = vrot.slane %v88_v11, 1 }
  0x3c   :  { %945 = vmatpush.bf16.msrb.mxu0 %v1498_v54  ;;  %v103_v23 = vsel %vm100_vm0, %v101_v12, %v102_v13  ;;  %v1983_v25 = vld [vmem:[#allocation6 + $0x64] sm:$0xf]  ;;  %v1447_v26 = vld [vmem:[#allocation6 + $0x70] sm:$0xf0]  ;;  %v105_v28 = vsel %vm100_vm0, %v102_v13, %v104_v16  ;;  %v111_v29 = vsel %vm108_vm1, %v109_v14, %v110_v17  ;;  %v113_v30 = vsel %vm108_vm1, %v110_v17, %v112_v18  ;;  %v1517_v18 = vld [vmem:[#allocation6 + $0xe8] sm:$0xf] }
  0x3d   :  { %959 = vmatpush.bf16.msrb.mxu1 %v1626_v58  ;;  %v2015_v27 = vld [vmem:[#allocation6 + $0x164] sm:$0xf]  ;;  %v1575_v32 = vld [vmem:[#allocation6 + $0x170] sm:$0xf0]  ;;  %v2293_v34 = vpack.c.bf16 %v105_v28, %v103_v23  ;;  %v2295_v35 = vpack.c.bf16 %v113_v30, %v111_v29  ;;  %v1850_v36 = vor.u32 %v2083_v21, %v1847_v22  ;;  %896 = vmatmul.bf16.vlgmr.msra.gmra.mxu0 %v2287_v19  ;;  %v1645_v21 = vld [vmem:[#allocation6 + $0x1e8] sm:$0xf] }
  0x3e   :  { %973 = vmatpush.bf16.msrb.mxu2 %v1754_v59  ;;  %v2047_v33 = vld [vmem:[#allocation6 + $0x264] sm:$0xf]  ;;  %v1703_v37 = vld [vmem:[#allocation6 + $0x270] sm:$0xf0]  ;;  %v1450_v43 = vor.u32 %v1983_v25, %v1447_v26  ;;  %v95_v44 = vsel %vm92_vm2, %v93_v38, %v94_v39  ;;  %v97_v45 = vsel %vm92_vm2, %v94_v39, %v96_v40  ;;  %v1578_v46 = vor.u32 %v2015_v27, %v1575_v32  ;;  %v2034_v23 = vld [vmem:[#allocation6 + $0x1f4] sm:$0xf0] }
  0x3f   :  { %987 = vmatpush.bf16.msrb.mxu3 %v1882_v63  ;;  %v2079_v41 = vld [vmem:[#allocation6 + $0x364] sm:$0xf]  ;;  %v1831_v42 = vld [vmem:[#allocation6 + $0x370] sm:$0xf0]  ;;  %924 = vmatmul.bf16.vlgmr.msra.gmra.mxu2 %v2293_v34  ;;  %v1706_v47 = vor.u32 %v2047_v33, %v1703_v37  ;;  %v2300_v51 = vpack.c.bf16 %v97_v45, %v95_v44  ;;  %v2066_v25 = vld [vmem:[#allocation6 + $0x2f4] sm:$0xf0]  ;;  %v1646_v32 = vor.u32 %v2034_v23, %v1645_v21 }
  0x40   :  { %946 = vmatpush.bf16.msrb.mxu0 %v1482_v1  ;;  %938 = vmatmul.bf16.vlgmr.msra.gmra.mxu3 %v2295_v35  ;;  %v1979_v48 = vld [vmem:[#allocation6 + $0x44] sm:$0xf]  ;;  %v1431_v49 = vld [vmem:[#allocation6 + $0x50] sm:$0xf0]  ;;  %v1834_v52 = vor.u32 %v2079_v41, %v1831_v42  ;;  %v1901_v28 = vld [vmem:[#allocation6 + $0x3e8] sm:$0xf] }
  0x41   :  { %960 = vmatpush.bf16.msrb.mxu1 %v1610_v5  ;;  %v2011_v50 = vld [vmem:[#allocation6 + $0x144] sm:$0xf]  ;;  %v1559_v53 = vld [vmem:[#allocation6 + $0x150] sm:$0xf0]  ;;  %v1434_v58 = vor.u32 %v1979_v48, %v1431_v49  ;;  %v2098_v29 = vld [vmem:[#allocation6 + $0x3f4] sm:$0xf0] }
  0x42   :  { %974 = vmatpush.bf16.msrb.mxu2 %v1738_v6  ;;  %v2043_v54 = vld [vmem:[#allocation6 + $0x244] sm:$0xf]  ;;  %v1687_v55 = vld [vmem:[#allocation6 + $0x250] sm:$0xf0]  ;;  %910 = vmatmul.bf16.vlgmr.msra.gmra.mxu1 %v2300_v51  ;;  %v1562_v59 = vor.u32 %v2011_v50, %v1559_v53  ;;  %v1998_v37 = vld [vmem:[#allocation6 + $0xd4] sm:$0xf0]  ;;  %v1902_v39 = vor.u32 %v2098_v29, %v1901_v28 }
  0x43   :  { %988 = vmatpush.bf16.msrb.mxu3 %v1866_v7  ;;  %v2075_v56 = vld [vmem:[#allocation6 + $0x344] sm:$0xf]  ;;  %v1815_v57 = vld [vmem:[#allocation6 + $0x350] sm:$0xf0]  ;;  %v1690_v60 = vor.u32 %v2043_v54, %v1687_v55  ;;  %v1629_v38 = vld [vmem:[#allocation6 + $0x1c8] sm:$0xf] }
  0x44   :  { %947 = vmatpush.bf16.msrb.mxu0 %v1466_v20  ;;  %v1975_v61 = vld [vmem:[#allocation6 + $0x24] sm:$0xf]  ;;  %v1415_v62 = vld [vmem:[#allocation6 + $0x30] sm:$0xf0]  ;;  %v1818_v0 = vor.u32 %v2075_v56, %v1815_v57  ;;  %v2002_v20 = vld [vmem:[#allocation6 + $0xf4] sm:$0xf0] }
  0x45   :  { %961 = vmatpush.bf16.msrb.mxu1 %v1594_v24  ;;  %v2007_v63 = vld [vmem:[#allocation6 + $0x124] sm:$0xf]  ;;  %v1543_v1 = vld [vmem:[#allocation6 + $0x130] sm:$0xf0]  ;;  %v1418_v6 = vor.u32 %v1975_v61, %v1415_v62  ;;  %v1773_v24 = vld [vmem:[#allocation6 + $0x2e8] sm:$0xf] }
  0x46   :  { %975 = vmatpush.bf16.msrb.mxu2 %v1722_v31  ;;  %v2039_v2 = vld [vmem:[#allocation6 + $0x224] sm:$0xf]  ;;  %v1671_v3 = vld [vmem:[#allocation6 + $0x230] sm:$0xf0]  ;;  %v1546_v9 = vor.u32 %v2007_v63, %v1543_v1  ;;  %v1518_v31 = vor.u32 %v2002_v20, %v1517_v18  ;;  %v1774_v33 = vor.u32 %v2066_v25, %v1773_v24  ;;  %v2030_v40 = vld [vmem:[#allocation6 + $0x1d4] sm:$0xf0] }
  0x47   :  { %989 = vmatpush.bf16.msrb.mxu3 %v1850_v36  ;;  %v2071_v4 = vld [vmem:[#allocation6 + $0x324] sm:$0xf]  ;;  %v1799_v5 = vld [vmem:[#allocation6 + $0x330] sm:$0xf0]  ;;  %v1674_v10 = vor.u32 %v2039_v2, %v1671_v3  ;;  %v1501_v36 = vld [vmem:[#allocation6 + $0xc8] sm:$0xf] }
  0x48   :  { %948 = vmatpush.bf16.msrb.mxu0 %v1450_v43  ;;  %v1971_v7 = vld [vmem:[#allocation6 + $0x4] sm:$0xf]  ;;  %v1399_v8 = vld [vmem:[#allocation6 + $0x10] sm:$0xf0]  ;;  %v1802_v14 = vor.u32 %v2071_v4, %v1799_v5  ;;  %v1757_v41 = vld [vmem:[#allocation6 + $0x2c8] sm:$0xf]  ;;  %v1502_v45 = vor.u32 %v1998_v37, %v1501_v36 }
  0x49   :  { %962 = vmatpush.bf16.msrb.mxu1 %v1578_v46  ;;  %v2003_v11 = vld [vmem:[#allocation6 + $0x104] sm:$0xf]  ;;  %v1527_v12 = vld [vmem:[#allocation6 + $0x110] sm:$0xf0]  ;;  %v1402_v22 = vor.u32 %v1971_v7, %v1399_v8  ;;  %v2062_v42 = vld [vmem:[#allocation6 + $0x2d4] sm:$0xf0]  ;;  %v1630_v46 = vor.u32 %v2030_v40, %v1629_v38 }
  0x4a   :  { %976 = vmatpush.bf16.msrb.mxu2 %v1706_v47  ;;  %v2035_v13 = vld [vmem:[#allocation6 + $0x204] sm:$0xf]  ;;  %v1655_v15 = vld [vmem:[#allocation6 + $0x210] sm:$0xf0]  ;;  %v1530_v26 = vor.u32 %v2003_v11, %v1527_v12  ;;  %v1885_v43 = vld [vmem:[#allocation6 + $0x3c8] sm:$0xf]  ;;  %v1758_v47 = vor.u32 %v2062_v42, %v1757_v41 }
  0x4b   :  { %990 = vmatpush.bf16.msrb.mxu3 %v1834_v52  ;;  %v2067_v16 = vld [vmem:[#allocation6 + $0x304] sm:$0xf]  ;;  %v1783_v17 = vld [vmem:[#allocation6 + $0x310] sm:$0xf0]  ;;  %v1658_v27 = vor.u32 %v2035_v13, %v1655_v15  ;;  %v2094_v44 = vld [vmem:[#allocation6 + $0x3d4] sm:$0xf0] }
  0x4c   :  { %949 = vmatpush.bf16.msrb.mxu0 %v1434_v58  ;;  %v1786_v30 = vor.u32 %v2067_v16, %v1783_v17  ;;  %v1485_v48 = vld [vmem:[#allocation6 + $0xa8] sm:$0xf]  ;;  %v1994_v49 = vld [vmem:[#allocation6 + $0xb4] sm:$0xf0]  ;;  %v1886_v52 = vor.u32 %v2094_v44, %v1885_v43 }
  0x4d   :  { %963 = vmatpush.bf16.msrb.mxu1 %v1562_v59  ;;  %v1613_v50 = vld [vmem:[#allocation6 + $0x1a8] sm:$0xf]  ;;  %v2026_v53 = vld [vmem:[#allocation6 + $0x1b4] sm:$0xf0]  ;;  %v1486_v58 = vor.u32 %v1994_v49, %v1485_v48 }
  0x4e   :  { %977 = vmatpush.bf16.msrb.mxu2 %v1690_v60  ;;  %v1741_v54 = vld [vmem:[#allocation6 + $0x2a8] sm:$0xf]  ;;  %v2058_v55 = vld [vmem:[#allocation6 + $0x2b4] sm:$0xf0]  ;;  %v1614_v59 = vor.u32 %v2026_v53, %v1613_v50 }
  0x4f   :  { %991 = vmatpush.bf16.msrb.mxu3 %v1818_v0  ;;  %v1869_v56 = vld [vmem:[#allocation6 + $0x3a8] sm:$0xf]  ;;  %v2090_v57 = vld [vmem:[#allocation6 + $0x3b4] sm:$0xf0]  ;;  %v1742_v60 = vor.u32 %v2058_v55, %v1741_v54 }
  0x50   :  { %950 = vmatpush.bf16.msrb.mxu0 %v1418_v6  ;;  %v1469_v61 = vld [vmem:[#allocation6 + $0x88] sm:$0xf]  ;;  %v1990_v62 = vld [vmem:[#allocation6 + $0x94] sm:$0xf0]  ;;  %v1870_v0 = vor.u32 %v2090_v57, %v1869_v56 }
  0x51   :  { %964 = vmatpush.bf16.msrb.mxu1 %v1546_v9  ;;  %v1597_v63 = vld [vmem:[#allocation6 + $0x188] sm:$0xf]  ;;  %v2022_v1 = vld [vmem:[#allocation6 + $0x194] sm:$0xf0]  ;;  %v1470_v6 = vor.u32 %v1990_v62, %v1469_v61  ;;  %v1647_v62 = vld [vmem:[#allocation6 + $0x1f8] sm:$0xf0] }
  0x52   :  { %978 = vmatpush.bf16.msrb.mxu2 %v1674_v10  ;;  %v1725_v2 = vld [vmem:[#allocation6 + $0x288] sm:$0xf]  ;;  %v2054_v3 = vld [vmem:[#allocation6 + $0x294] sm:$0xf0]  ;;  %v1598_v7 = vor.u32 %v2022_v1, %v1597_v63  ;;  %v2064_v63 = vld [vmem:[#allocation6 + $0x2ec] sm:$0xf] }
  0x53   :  { %992 = vmatpush.bf16.msrb.mxu3 %v1802_v14  ;;  %v1853_v4 = vld [vmem:[#allocation6 + $0x388] sm:$0xf]  ;;  %v2086_v5 = vld [vmem:[#allocation6 + $0x394] sm:$0xf0]  ;;  %v1726_v8 = vor.u32 %v2054_v3, %v1725_v2  ;;  %v2096_v3 = vld [vmem:[#allocation6 + $0x3ec] sm:$0xf] }
  0x54   :  { %951 = vmatpush.bf16.msrb.mxu0 %v1402_v22  ;;  %v1453_v9 = vld [vmem:[#allocation6 + $0x68] sm:$0xf]  ;;  %v1986_v10 = vld [vmem:[#allocation6 + $0x74] sm:$0xf0]  ;;  %v1854_v12 = vor.u32 %v2086_v5, %v1853_v4  ;;  %v1903_v4 = vld [vmem:[#allocation6 + $0x3f8] sm:$0xf0] }
  0x55   :  { %965 = vmatpush.bf16.msrb.mxu1 %v1530_v26  ;;  %v1581_v11 = vld [vmem:[#allocation6 + $0x168] sm:$0xf]  ;;  %v2018_v13 = vld [vmem:[#allocation6 + $0x174] sm:$0xf0]  ;;  %v1454_v18 = vor.u32 %v1986_v10, %v1453_v9  ;;  %v1996_v9 = vld [vmem:[#allocation6 + $0xcc] sm:$0xf] }
  0x56   :  { %979 = vmatpush.bf16.msrb.mxu2 %v1658_v27  ;;  %v1709_v14 = vld [vmem:[#allocation6 + $0x268] sm:$0xf]  ;;  %v2050_v15 = vld [vmem:[#allocation6 + $0x274] sm:$0xf0]  ;;  %v1582_v20 = vor.u32 %v2018_v13, %v1581_v11  ;;  %v1503_v10 = vld [vmem:[#allocation6 + $0xd8] sm:$0xf0] }
  0x57   :  { %993 = vmatpush.bf16.msrb.mxu3 %v1786_v30  ;;  %952 = vmatmul.bf16.vlgmr.msrb.gmra.mxu0 %v2287_v19  ;;  %v1837_v16 = vld [vmem:[#allocation6 + $0x368] sm:$0xf]  ;;  %v2082_v17 = vld [vmem:[#allocation6 + $0x374] sm:$0xf0]  ;;  %v1710_v21 = vor.u32 %v2050_v15, %v1709_v14  ;;  %v2028_v11 = vld [vmem:[#allocation6 + $0x1cc] sm:$0xf] }
  0x58   :  { %1000 = vmatpush.bf16.msra.mxu0 %v1518_v31  ;;  %966 = vmatmul.bf16.vlgmr.msrb.gmra.mxu1 %v2300_v51  ;;  %v1437_v22 = vld [vmem:[#allocation6 + $0x48] sm:$0xf]  ;;  %v1982_v23 = vld [vmem:[#allocation6 + $0x54] sm:$0xf0]  ;;  %v1838_v25 = vor.u32 %v2082_v17, %v1837_v16  ;;  %v1631_v13 = vld [vmem:[#allocation6 + $0x1d8] sm:$0xf0] }
  0x59   :  { %1014 = vmatpush.bf16.msra.mxu1 %v1646_v32  ;;  %980 = vmatmul.bf16.vlgmr.msrb.gmra.mxu2 %v2293_v34  ;;  %v1565_v24 = vld [vmem:[#allocation6 + $0x148] sm:$0xf]  ;;  %v2014_v26 = vld [vmem:[#allocation6 + $0x154] sm:$0xf0]  ;;  %v1438_v31 = vor.u32 %v1982_v23, %v1437_v22  ;;  %v2060_v14 = vld [vmem:[#allocation6 + $0x2cc] sm:$0xf] }
  0x5a   :  { %1028 = vmatpush.bf16.msra.mxu2 %v1774_v33  ;;  %994 = vmatmul.bf16.vlgmr.msrb.gmra.mxu3 %v2295_v35  ;;  %v1693_v27 = vld [vmem:[#allocation6 + $0x248] sm:$0xf]  ;;  %v2046_v28 = vld [vmem:[#allocation6 + $0x254] sm:$0xf0]  ;;  %v1566_v32 = vor.u32 %v2014_v26, %v1565_v24  ;;  %v1759_v15 = vld [vmem:[#allocation6 + $0x2d8] sm:$0xf0] }
  0x5b   :  { %1042 = vmatpush.bf16.msra.mxu3 %v1902_v39  ;;  %v1821_v29 = vld [vmem:[#allocation6 + $0x348] sm:$0xf]  ;;  %v2078_v30 = vld [vmem:[#allocation6 + $0x354] sm:$0xf0]  ;;  %v1694_v33 = vor.u32 %v2046_v28, %v1693_v27  ;;  %v2092_v16 = vld [vmem:[#allocation6 + $0x3cc] sm:$0xf] }
  0x5c   :  { %1001 = vmatpush.bf16.msra.mxu0 %v1502_v45  ;;  %v1421_v36 = vld [vmem:[#allocation6 + $0x28] sm:$0xf]  ;;  %v1978_v37 = vld [vmem:[#allocation6 + $0x34] sm:$0xf0]  ;;  %v1822_v39 = vor.u32 %v2078_v30, %v1821_v29  ;;  %v1887_v17 = vld [vmem:[#allocation6 + $0x3d8] sm:$0xf0] }
  0x5d   :  { %1015 = vmatpush.bf16.msra.mxu1 %v1630_v46  ;;  %v1549_v38 = vld [vmem:[#allocation6 + $0x128] sm:$0xf]  ;;  %v2010_v40 = vld [vmem:[#allocation6 + $0x134] sm:$0xf0]  ;;  %v1422_v45 = vor.u32 %v1978_v37, %v1421_v36  ;;  %v1992_v22 = vld [vmem:[#allocation6 + $0xac] sm:$0xf] }
  0x5e   :  { %1029 = vmatpush.bf16.msra.mxu2 %v1758_v47  ;;  %v1677_v41 = vld [vmem:[#allocation6 + $0x228] sm:$0xf]  ;;  %v2042_v42 = vld [vmem:[#allocation6 + $0x234] sm:$0xf0]  ;;  %v1550_v48 = vor.u32 %v2010_v40, %v1549_v38  ;;  %v1487_v23 = vld [vmem:[#allocation6 + $0xb8] sm:$0xf0] }
  0x5f   :  { %1043 = vmatpush.bf16.msra.mxu3 %v1886_v52  ;;  %v1805_v43 = vld [vmem:[#allocation6 + $0x328] sm:$0xf]  ;;  %v2074_v44 = vld [vmem:[#allocation6 + $0x334] sm:$0xf0]  ;;  %v1678_v49 = vor.u32 %v2042_v42, %v1677_v41  ;;  %v2024_v24 = vld [vmem:[#allocation6 + $0x1ac] sm:$0xf] }
  0x60   :  { %1002 = vmatpush.bf16.msra.mxu0 %v1486_v58  ;;  %v1405_v46 = vld [vmem:[#allocation6 + $0x8] sm:$0xf]  ;;  %v1974_v47 = vld [vmem:[#allocation6 + $0x14] sm:$0xf0]  ;;  %v1806_v54 = vor.u32 %v2074_v44, %v1805_v43  ;;  %v2000_v58 = vld [vmem:[#allocation6 + $0xec] sm:$0xf] }
  0x61   :  { %1016 = vmatpush.bf16.msra.mxu1 %v1614_v59  ;;  %v1533_v50 = vld [vmem:[#allocation6 + $0x108] sm:$0xf]  ;;  %v2006_v52 = vld [vmem:[#allocation6 + $0x114] sm:$0xf0]  ;;  %v1519_v59 = vld [vmem:[#allocation6 + $0xf8] sm:$0xf0]  ;;  %v1406_v61 = vor.u32 %v1974_v47, %v1405_v46 }
  0x62   :  { %1030 = vmatpush.bf16.msra.mxu2 %v1742_v60  ;;  %v1661_v53 = vld [vmem:[#allocation6 + $0x208] sm:$0xf]  ;;  %v2038_v55 = vld [vmem:[#allocation6 + $0x214] sm:$0xf0]  ;;  %v2032_v60 = vld [vmem:[#allocation6 + $0x1ec] sm:$0xf]  ;;  %v1534_v1 = vor.u32 %v2006_v52, %v1533_v50 }
  0x63   :  { %1044 = vmatpush.bf16.msra.mxu3 %v1870_v0  ;;  %v1789_v56 = vld [vmem:[#allocation6 + $0x308] sm:$0xf]  ;;  %v2070_v57 = vld [vmem:[#allocation6 + $0x314] sm:$0xf0]  ;;  %v1775_v0 = vld [vmem:[#allocation6 + $0x2f8] sm:$0xf0]  ;;  %v1662_v2 = vor.u32 %v2038_v55, %v1661_v53 }
  0x64   :  { %1003 = vmatpush.bf16.msra.mxu0 %v1470_v6  ;;  %v1790_v5 = vor.u32 %v2070_v57, %v1789_v56  ;;  %v1522_v6 = vor.u32 %v2000_v58, %v1519_v59  ;;  %v1615_v26 = vld [vmem:[#allocation6 + $0x1b8] sm:$0xf0]  ;;  %v2056_v27 = vld [vmem:[#allocation6 + $0x2ac] sm:$0xf] }
  0x65   :  { %1017 = vmatpush.bf16.msra.mxu1 %v1598_v7  ;;  %v1650_v7 = vor.u32 %v2032_v60, %v1647_v62  ;;  %v1743_v28 = vld [vmem:[#allocation6 + $0x2b8] sm:$0xf0]  ;;  %v2088_v29 = vld [vmem:[#allocation6 + $0x3ac] sm:$0xf] }
  0x66   :  { %1031 = vmatpush.bf16.msra.mxu2 %v1726_v8  ;;  %v1778_v8 = vor.u32 %v2064_v63, %v1775_v0  ;;  %v1871_v30 = vld [vmem:[#allocation6 + $0x3b8] sm:$0xf0]  ;;  %v1988_v36 = vld [vmem:[#allocation6 + $0x8c] sm:$0xf] }
  0x67   :  { %1045 = vmatpush.bf16.msra.mxu3 %v1854_v12  ;;  %v1906_v12 = vor.u32 %v2096_v3, %v1903_v4  ;;  %v1471_v37 = vld [vmem:[#allocation6 + $0x98] sm:$0xf0]  ;;  %v2020_v38 = vld [vmem:[#allocation6 + $0x18c] sm:$0xf] }
  0x68   :  { %1004 = vmatpush.bf16.msra.mxu0 %v1454_v18  ;;  %v1506_v18 = vor.u32 %v1996_v9, %v1503_v10  ;;  %v1599_v40 = vld [vmem:[#allocation6 + $0x198] sm:$0xf0]  ;;  %v2052_v41 = vld [vmem:[#allocation6 + $0x28c] sm:$0xf] }
  0x69   :  { %1018 = vmatpush.bf16.msra.mxu1 %v1582_v20  ;;  %v1634_v20 = vor.u32 %v2028_v11, %v1631_v13  ;;  %v1727_v42 = vld [vmem:[#allocation6 + $0x298] sm:$0xf0]  ;;  %v2084_v43 = vld [vmem:[#allocation6 + $0x38c] sm:$0xf]  ;;  %v1602_v46 = vor.u32 %v2020_v38, %v1599_v40 }
  0x6a   :  { %1032 = vmatpush.bf16.msra.mxu2 %v1710_v21  ;;  %v1762_v21 = vor.u32 %v2060_v14, %v1759_v15  ;;  %v1855_v44 = vld [vmem:[#allocation6 + $0x398] sm:$0xf0]  ;;  %v1730_v47 = vor.u32 %v2052_v41, %v1727_v42  ;;  %v2016_v50 = vld [vmem:[#allocation6 + $0x16c] sm:$0xf] }
  0x6b   :  { %1046 = vmatpush.bf16.msra.mxu3 %v1838_v25  ;;  %v1890_v25 = vor.u32 %v2092_v16, %v1887_v17  ;;  %v1858_v52 = vor.u32 %v2084_v43, %v1855_v44  ;;  %v1583_v53 = vld [vmem:[#allocation6 + $0x178] sm:$0xf0]  ;;  %v2080_v56 = vld [vmem:[#allocation6 + $0x36c] sm:$0xf] }
  0x6c   :  { %1005 = vmatpush.bf16.msra.mxu0 %v1438_v31  ;;  %v1490_v31 = vor.u32 %v1992_v22, %v1487_v23  ;;  %v1711_v55 = vld [vmem:[#allocation6 + $0x278] sm:$0xf0]  ;;  %v1586_v59 = vor.u32 %v2016_v50, %v1583_v53  ;;  %v2012_v63 = vld [vmem:[#allocation6 + $0x14c] sm:$0xf]  ;;  %v2103_v50 = vld [vmem:[#allocation7 + $0x20] sm:$0xff] }
  0x6d   :  { %1019 = vmatpush.bf16.msra.mxu1 %v1566_v32  ;;  %v1618_v32 = vor.u32 %v2024_v24, %v1615_v26  ;;  %v1839_v57 = vld [vmem:[#allocation6 + $0x378] sm:$0xf0]  ;;  %v2076_v4 = vld [vmem:[#allocation6 + $0x34c] sm:$0xf] }
  0x6e   :  { %1033 = vmatpush.bf16.msra.mxu2 %v1694_v33  ;;  %v1746_v33 = vor.u32 %v2056_v27, %v1743_v28  ;;  %v1439_v62 = vld [vmem:[#allocation6 + $0x58] sm:$0xf0]  ;;  %v1842_v0 = vor.u32 %v2080_v56, %v1839_v57  ;;  %v1976_v9 = vld [vmem:[#allocation6 + $0x2c] sm:$0xf] }
  0x6f   :  { %1047 = vmatpush.bf16.msra.mxu3 %v1822_v39  ;;  %v1874_v39 = vor.u32 %v2088_v29, %v1871_v30  ;;  %v1695_v3 = vld [vmem:[#allocation6 + $0x258] sm:$0xf0]  ;;  %v2008_v11 = vld [vmem:[#allocation6 + $0x12c] sm:$0xf] }
  0x70   :  { %1006 = vmatpush.bf16.msra.mxu0 %v1422_v45  ;;  %v1474_v45 = vor.u32 %v1988_v36, %v1471_v37  ;;  %v1423_v10 = vld [vmem:[#allocation6 + $0x38] sm:$0xf0]  ;;  %v2040_v14 = vld [vmem:[#allocation6 + $0x22c] sm:$0xf] }
  0x71   :  { %1020 = vmatpush.bf16.msra.mxu1 %v1550_v48  ;;  %v1984_v48 = vld [vmem:[#allocation6 + $0x6c] sm:$0xf]  ;;  %v1551_v13 = vld [vmem:[#allocation6 + $0x138] sm:$0xf0] }
  0x72   :  { %1034 = vmatpush.bf16.msra.mxu2 %v1678_v49  ;;  %v1455_v49 = vld [vmem:[#allocation6 + $0x78] sm:$0xf0]  ;;  %v2072_v16 = vld [vmem:[#allocation6 + $0x32c] sm:$0xf] }
  0x73   :  { %1048 = vmatpush.bf16.msra.mxu3 %v1806_v54  ;;  %v2048_v54 = vld [vmem:[#allocation6 + $0x26c] sm:$0xf]  ;;  %v1458_v58 = vor.u32 %v1984_v48, %v1455_v49  ;;  %v1679_v15 = vld [vmem:[#allocation6 + $0x238] sm:$0xf0] }
  0x74   :  { %1007 = vmatpush.bf16.msra.mxu0 %v1406_v61  ;;  %v1714_v60 = vor.u32 %v2048_v54, %v1711_v55  ;;  %v1980_v61 = vld [vmem:[#allocation6 + $0x4c] sm:$0xf]  ;;  %v1807_v17 = vld [vmem:[#allocation6 + $0x338] sm:$0xf0] }
  0x75   :  { %1021 = vmatpush.bf16.msra.mxu1 %v1534_v1  ;;  %v1567_v1 = vld [vmem:[#allocation6 + $0x158] sm:$0xf0]  ;;  %v1972_v22 = vld [vmem:[#allocation6 + $0xc] sm:$0xf] }
  0x76   :  { %1035 = vmatpush.bf16.msra.mxu2 %v1662_v2  ;;  %v2044_v2 = vld [vmem:[#allocation6 + $0x24c] sm:$0xf]  ;;  %v1407_v23 = vld [vmem:[#allocation6 + $0x18] sm:$0xf0] }
  0x77   :  { %1049 = vmatpush.bf16.msra.mxu3 %v1790_v5  ;;  %1008 = vmatmul.bf16.vlgmr.msra.gmra.mxu0 %v2287_v19  ;;  %v1823_v5 = vld [vmem:[#allocation6 + $0x358] sm:$0xf0]  ;;  %v2004_v24 = vld [vmem:[#allocation6 + $0x10c] sm:$0xf] }
  0x78   :  { %1056 = vmatpush.bf16.msrb.mxu0 %v1522_v6  ;;  %1022 = vmatmul.bf16.vlgmr.msra.gmra.mxu1 %v2300_v51  ;;  %v1442_v6 = vor.u32 %v1980_v61, %v1439_v62  ;;  %v1535_v26 = vld [vmem:[#allocation6 + $0x118] sm:$0xf0]  ;;  %v2036_v27 = vld [vmem:[#allocation6 + $0x20c] sm:$0xf] }
  0x79   :  { %1070 = vmatpush.bf16.msrb.mxu1 %v1650_v7  ;;  %1036 = vmatmul.bf16.vlgmr.msra.gmra.mxu2 %v2293_v34  ;;  %v1570_v7 = vor.u32 %v2012_v63, %v1567_v1  ;;  %v1663_v28 = vld [vmem:[#allocation6 + $0x218] sm:$0xf0]  ;;  %v2068_v29 = vld [vmem:[#allocation6 + $0x30c] sm:$0xf] }
  0x7a   :  { %1084 = vmatpush.bf16.msrb.mxu2 %v1778_v8  ;;  %1050 = vmatmul.bf16.vlgmr.msra.gmra.mxu3 %v2295_v35  ;;  %v1698_v8 = vor.u32 %v2044_v2, %v1695_v3  ;;  %v1791_v30 = vld [vmem:[#allocation6 + $0x318] sm:$0xf0]  ;;  %v2104_v48 = vld [vmem:[#allocation7 + $0x28] sm:$0xff] }
  0x7b   :  { %1098 = vmatpush.bf16.msrb.mxu3 %v1906_v12  ;;  %v1826_v12 = vor.u32 %v2076_v4, %v1823_v5  ;;  %v1794_v36 = vor.u32 %v2068_v29, %v1791_v30  ;;  %v2102_v55 = vld [vmem:[#allocation7 + $0x18] sm:$0xff]  ;;  %v2100_v2 = vld [vmem:[#allocation7 + $0x8] sm:$0xff] }
  0x7c   :  { %1057 = vmatpush.bf16.msrb.mxu0 %v1506_v18  ;;  %v1426_v18 = vor.u32 %v1976_v9, %v1423_v10  ;;  %v2099_v10 = vld [vmem:[#allocation7] sm:$0xff]  ;;  %v2110_v29 = vld [vmem:[#allocation7 + $0x58] sm:$0xff] }
  0x7d   :  { %1071 = vmatpush.bf16.msrb.mxu1 %v1634_v20  ;;  %v1554_v20 = vor.u32 %v2008_v11, %v1551_v13  ;;  %v2114_v11 = vld [vmem:[#allocation7 + $0x78] sm:$0xff] }
  0x7e   :  { %1085 = vmatpush.bf16.msrb.mxu2 %v1762_v21  ;;  %v1682_v21 = vor.u32 %v2040_v14, %v1679_v15 }
  0x7f   :  { %1099 = vmatpush.bf16.msrb.mxu3 %v1890_v25  ;;  %v1810_v25 = vor.u32 %v2072_v16, %v1807_v17  ;;  %v2113_v17 = vld [vmem:[#allocation7 + $0x70] sm:$0xff] }
  0x80   :  { %1058 = vmatpush.bf16.msrb.mxu0 %v1490_v31  ;;  %v1410_v31 = vor.u32 %v1972_v22, %v1407_v23  ;;  %v2112_v22 = vld [vmem:[#allocation7 + $0x68] sm:$0xff] }
  0x81   :  { %1072 = vmatpush.bf16.msrb.mxu1 %v1618_v32  ;;  %v1538_v32 = vor.u32 %v2004_v24, %v1535_v26  ;;  %v2111_v26 = vld [vmem:[#allocation7 + $0x60] sm:$0xff] }
  0x82   :  { %1086 = vmatpush.bf16.msrb.mxu2 %v1746_v33  ;;  %v1666_v33 = vor.u32 %v2036_v27, %v1663_v28 }
  0x83   :  { %1100 = vmatpush.bf16.msrb.mxu3 %v1874_v39 }
  0x84   :  { %1059 = vmatpush.bf16.msrb.mxu0 %v1474_v45 }
  0x85   :  { %1073 = vmatpush.bf16.msrb.mxu1 %v1602_v46 }
  0x86   :  { %1087 = vmatpush.bf16.msrb.mxu2 %v1730_v47  ;;  %v2106_v47 = vld [vmem:[#allocation7 + $0x38] sm:$0xff] }
  0x87   :  { %1101 = vmatpush.bf16.msrb.mxu3 %v1858_v52 }
  0x88   :  { %1060 = vmatpush.bf16.msrb.mxu0 %v1458_v58 }
  0x89   :  { %1074 = vmatpush.bf16.msrb.mxu1 %v1586_v59 }
  0x8a   :  { %1088 = vmatpush.bf16.msrb.mxu2 %v1714_v60  ;;  %v2101_v60 = vld [vmem:[#allocation7 + $0x10] sm:$0xff] }
  0x8b   :  { %1102 = vmatpush.bf16.msrb.mxu3 %v1842_v0 }
  0x8c   :  { %1061 = vmatpush.bf16.msrb.mxu0 %v1442_v6 }
  0x8d   :  { %1075 = vmatpush.bf16.msrb.mxu1 %v1570_v7 }
  0x8e   :  { %1089 = vmatpush.bf16.msrb.mxu2 %v1698_v8 }
  0x8f   :  { %1103 = vmatpush.bf16.msrb.mxu3 %v1826_v12 }
  0x90   :  { %1062 = vmatpush.bf16.msrb.mxu0 %v1426_v18 }
  0x91   :  { %1076 = vmatpush.bf16.msrb.mxu1 %v1554_v20 }
  0x92   :  { %1090 = vmatpush.bf16.msrb.mxu2 %v1682_v21 }
  0x93   :  { %1104 = vmatpush.bf16.msrb.mxu3 %v1810_v25 }
  0x94   :  { %1063 = vmatpush.bf16.msrb.mxu0 %v1410_v31 }
  0x95   :  { %1077 = vmatpush.bf16.msrb.mxu1 %v1538_v32 }
  0x96   :  { %1091 = vmatpush.bf16.msrb.mxu2 %v1666_v33 }
  0x97   :  { %1105 = vmatpush.bf16.msrb.mxu3 %v1794_v36  ;;  %1064 = vmatmul.bf16.vlgmr.msrb.gmra.mxu0 %v2287_v19 }
  0x98   :  { %1078 = vmatmul.bf16.vlgmr.msrb.gmra.mxu1 %v2300_v51  ;;  %1302 = vmatpush.bf16.msra.mxu0 %v2106_v47 }
  0x99   :  { %1092 = vmatmul.bf16.vlgmr.msrb.gmra.mxu2 %v2293_v34  ;;  %v2105_v34 = vld [vmem:[#allocation7 + $0x30] sm:$0xff]  ;;  %1316 = vmatpush.bf16.msra.mxu1 %v2114_v11 }
  0x9a   :  { %1106 = vmatmul.bf16.vlgmr.msrb.gmra.mxu3 %v2295_v35 }
  0x9c   :  { %1303 = vmatpush.bf16.msra.mxu0 %v2105_v34 }
  0x9d   :  { %1317 = vmatpush.bf16.msra.mxu1 %v2113_v17 }
  0xa0   :  { %1304 = vmatpush.bf16.msra.mxu0 %v2104_v48 }
  0xa1   :  { %1318 = vmatpush.bf16.msra.mxu1 %v2112_v22 }
  0xa4   :  { %1305 = vmatpush.bf16.msra.mxu0 %v2103_v50 }
  0xa5   :  { %1319 = vmatpush.bf16.msra.mxu1 %v2111_v26 }
  0xa8   :  { %1306 = vmatpush.bf16.msra.mxu0 %v2102_v55 }
  0xa9   :  { %1320 = vmatpush.bf16.msra.mxu1 %v2110_v29 }
  0xac   :  { %1307 = vmatpush.bf16.msra.mxu0 %v2101_v60 }
  0xb0   :  { %1308 = vmatpush.bf16.msra.mxu0 %v2100_v2 }
  0xb4   :  { %1309 = vmatpush.bf16.msra.mxu0 %v2099_v10 }
  0xba   :  { %v897_v37 = vpop.f32.mrf.mxu0 }
  0xbf   :  { %v911_v38 = vpop.f32.mrf.mxu1 }
  0xc0   :  { %v912_v54 = vadd.f32 %v911_v38, %v897_v37  ;;  %v2109_v38 = vld [vmem:[#allocation7 + $0x50] sm:$0xff] }
  0xc1   :  { %1321 = vmatpush.bf16.msra.mxu1 %v2109_v38 }
  0xc2   :  { %v925_v39 = vpop.f32.mrf.mxu2  ;;  %v899_v41 = vpop.f32.mrf.mxu0 }
  0xc3   :  { %v939_v40 = vpop.f32.mrf.mxu3  ;;  %v926_v58 = vadd.f32 %v925_v39, %v912_v54 }
  0xc5   :  { %v940_v62 = vadd.f32 %v939_v40, %v926_v58 }
  0xc7   :  { %v913_v42 = vpop.f32.mrf.mxu1  ;;  %v1112_v6 = vmul.f32 %v940_v62, %v940_v62 }
  0xc8   :  { %v914_v63 = vadd.f32 %v913_v42, %v899_v41 }
  0xca   :  { %v927_v43 = vpop.f32.mrf.mxu2 }
  0xcb   :  { %v941_v44 = vpop.f32.mrf.mxu3  ;;  %v928_v7 = vadd.f32 %v927_v43, %v914_v63 }
  0xcd   :  { %v942_v14 = vadd.f32 %v941_v44, %v928_v7  ;;  %v2108_v44 = vld [vmem:[#allocation7 + $0x48] sm:$0xff] }
  0xce   :  { %1322 = vmatpush.bf16.msra.mxu1 %v2108_v44 }
  0xcf   :  { %v1114_v20 = vmul.f32 %v942_v14, %v942_v14 }
  0xd4   :  { %v2315_v45 = vpop.f32.mrf.mxu0 }
  0xd5   :  { %v2317_v46 = vpop.f32.mrf.mxu1 }
  0xd6   :  { %v968_v30 = vadd.f32 %v2317_v46, %v2315_v45 }
  0xdc   :  { %v2319_v19 = vpop.f32.mrf.mxu2  ;;  %v2323_v35 = vpop.f32.mrf.mxu0 }
  0xdd   :  { %v2321_v51 = vpop.f32.mrf.mxu3  ;;  %v2325_v49 = vpop.f32.mrf.mxu1  ;;  %v982_v39 = vadd.f32 %v2319_v19, %v968_v30  ;;  %v2107_v19 = vld [vmem:[#allocation7 + $0x40] sm:$0xff] }
  0xde   :  { %v970_v45 = vadd.f32 %v2325_v49, %v2323_v35  ;;  %1323 = vmatpush.bf16.msra.mxu1 %v2107_v19 }
  0xdf   :  { %v996_v47 = vadd.f32 %v2321_v51, %v982_v39 }
  0xe4   :  { %v2327_v52 = vpop.f32.mrf.mxu2 }
  0xe5   :  { %v2329_v53 = vpop.f32.mrf.mxu3  ;;  %v984_v58 = vadd.f32 %v2327_v52, %v970_v45 }
  0xf4   :  { %v1009_v56 = vpop.f32.mrf.mxu0 }
  0xf5   :  { %v1023_v57 = vpop.f32.mrf.mxu1 }
  0xf6   :  { %v1024_v59 = vadd.f32 %v1023_v57, %v1009_v56  ;;  %v1113_v57 = vmul.f32 %v996_v47, %v996_v47 }
  0xfc   :  { %v1037_v61 = vpop.f32.mrf.mxu2  ;;  %v1011_v4 = vpop.f32.mrf.mxu0 }
  0xfd   :  { %v1038_v0 = vadd.f32 %v1037_v61, %v1024_v59  ;;  %v1051_v1 = vpop.f32.mrf.mxu3  ;;  %v1025_v5 = vpop.f32.mrf.mxu1 }
  0xfe   :  { %v1026_v9 = vadd.f32 %v1025_v5, %v1011_v4  ;;  %v998_v5 = vadd.f32 %v2329_v53, %v984_v58 }
  0xff   :  { %v1052_v3 = vadd.f32 %v1051_v1, %v1038_v0 }
 0x101   :  { %v1116_v8 = vmul.f32 %v1052_v3, %v1052_v3 }
 0x103   :  { %v2331_v12 = vadd.f32 %v1116_v8, %v1112_v6 }
 0x104   :  { %v1039_v13 = vpop.f32.mrf.mxu2 }
 0x105   :  { %2126 = vrsqrt.f32 %v2331_v12  ;;  %v1040_v15 = vadd.f32 %v1039_v13, %v1026_v9  ;;  %v1053_v16 = vpop.f32.mrf.mxu3  ;;  %vm1131_vm3 = vcmp.eq.f32.partialorder %v2331_v12, inf  ;;  %v1134_v61 = vand.u32 2147483648, %v2331_v12 }
 0x106   :  { %vm1133_vm5 = vcmp.eq.f32.partialorder %v2331_v12, 0.0  ;;  %v1115_v9 = vmul.f32 %v998_v5, %v998_v5 }
 0x107   :  { %v1054_v18 = vadd.f32 %v1053_v16, %v1040_v15 }
 0x109   :  { %v1118_v21 = vmul.f32 %v1054_v18, %v1054_v18 }
 0x10b   :  { %v2127_v23 = vpop.eup %2126  ;;  %v1122_v24 = vadd.f32 %v1118_v21, %v1114_v20 }
 0x10c   :  { %v1125_v25 = vmul.f32 %v2127_v23, %v2331_v12 }
 0x10d   :  { %2128 = vrsqrt.f32 %v1122_v24  ;;  %vm1155_vm4 = vcmp.eq.f32.partialorder %v1122_v24, inf  ;;  %v1158_v62 = vand.u32 2147483648, %v1122_v24  ;;  %vm1157_vm6 = vcmp.eq.f32.partialorder %v1122_v24, 0.0 }
 0x10e   :  { %v1126_v27 = vmul.f32 %v2127_v23, %v1125_v25 }
 0x110   :  { %v1127_v28 = vmul.f32 0.5, %v1126_v27 }
 0x112   :  { %v1128_v31 = vsub.f32 1.5, %v1127_v28 }
 0x113   :  { %v2129_v32 = vpop.eup %2128 }
 0x114   :  { %v1065_v33 = vpop.f32.mrf.mxu0  ;;  %v1149_v37 = vmul.f32 %v2129_v32, %v1122_v24  ;;  %v1129_v40 = vmul.f32 %v2127_v23, %v1128_v31 }
 0x115   :  { %v1079_v36 = vpop.f32.mrf.mxu1 }
 0x116   :  { %v1150_v41 = vmul.f32 %v2129_v32, %v1149_v37  ;;  %v1080_v42 = vadd.f32 %v1079_v36, %v1065_v33  ;;  %v1130_v34 = vmul.f32 %v1129_v40, %v2331_v12 }
 0x118   :  { %v1151_v43 = vmul.f32 0.5, %v1150_v41  ;;  %v1132_v60 = vsel %vm1131_vm3, %v2331_v12, %v1130_v34 }
 0x119   :  { %v1135_v2 = vsel %vm1133_vm5, %v1134_v61, %v1132_v60 }
 0x11a   :  { %v1152_v48 = vsub.f32 1.5, %v1151_v43 }
 0x11c   :  { %v1093_v46 = vpop.f32.mrf.mxu2  ;;  %v1153_v55 = vmul.f32 %v2129_v32, %v1152_v48  ;;  %v1067_v59 = vpop.f32.mrf.mxu0 }
 0x11d   :  { %v1094_v50 = vadd.f32 %v1093_v46, %v1080_v42  ;;  %v1107_v54 = vpop.f32.mrf.mxu3  ;;  %v1081_v51 = vpop.f32.mrf.mxu1 }
 0x11e   :  { %v1154_v35 = vmul.f32 %v1153_v55, %v1122_v24  ;;  %v1082_v1 = vadd.f32 %v1081_v51, %v1067_v59 }
 0x11f   :  { %v1108_v56 = vadd.f32 %v1107_v54, %v1094_v50 }
 0x120   :  { %v1156_v63 = vsel %vm1155_vm4, %v1122_v24, %v1154_v35 }
 0x121   :  { %v1117_v49 = vmul.f32 %v1108_v56, %v1108_v56  ;;  %v1159_v3 = vsel %vm1157_vm6, %v1158_v62, %v1156_v63 }
 0x122   :  { %v1172_v4 = vpack.c.bf16 %v1159_v3, %v1135_v2 }
 0x123   :  { %v1121_v0 = vadd.f32 %v1117_v49, %v1113_v57 }
 0x124   :  { %v1095_v52 = vpop.f32.mrf.mxu2  ;;  %1310 = vmatmul.bf16.vlgmr.msra.gmra.mxu0 %v1172_v4 }
 0x125   :  { %2130 = vrsqrt.f32 %v1121_v0  ;;  %v1096_v6 = vadd.f32 %v1095_v52, %v1082_v1  ;;  %v1109_v7 = vpop.f32.mrf.mxu3  ;;  %vm1143_vm7 = vcmp.eq.f32.partialorder %v1121_v0, inf  ;;  %v1146_v27 = vand.u32 2147483648, %v1121_v0 }
 0x126   :  { %vm1145_vm9 = vcmp.eq.f32.partialorder %v1121_v0, 0.0 }
 0x127   :  { %v1110_v8 = vadd.f32 %v1109_v7, %v1096_v6 }
 0x129   :  { %v1119_v10 = vmul.f32 %v1110_v8, %v1110_v8 }
 0x12b   :  { %v2131_v11 = vpop.eup %2130  ;;  %v1123_v12 = vadd.f32 %v1119_v10, %v1115_v9 }
 0x12c   :  { %v1137_v13 = vmul.f32 %v2131_v11, %v1121_v0 }
 0x12d   :  { %2132 = vrsqrt.f32 %v1123_v12  ;;  %vm1167_vm8 = vcmp.eq.f32.partialorder %v1123_v12, inf  ;;  %v1170_v28 = vand.u32 2147483648, %v1123_v12  ;;  %vm1169_vm10 = vcmp.eq.f32.partialorder %v1123_v12, 0.0 }
 0x12e   :  { %v1138_v14 = vmul.f32 %v2131_v11, %v1137_v13 }
 0x130   :  { %v1139_v15 = vmul.f32 0.5, %v1138_v14 }
 0x132   :  { %v1140_v16 = vsub.f32 1.5, %v1139_v15 }
 0x133   :  { %v2133_v17 = vpop.eup %2132 }
 0x134   :  { %v1161_v18 = vmul.f32 %v2133_v17, %v1123_v12  ;;  %v1141_v20 = vmul.f32 %v2131_v11, %v1140_v16 }
 0x136   :  { %v1162_v21 = vmul.f32 %v2133_v17, %v1161_v18  ;;  %v1142_v53 = vmul.f32 %v1141_v20, %v1121_v0 }
 0x138   :  { %v1163_v22 = vmul.f32 0.5, %v1162_v21  ;;  %v1144_v25 = vsel %vm1143_vm7, %v1121_v0, %v1142_v53 }
 0x139   :  { %v1147_v30 = vsel %vm1145_vm9, %v1146_v27, %v1144_v25 }
 0x13a   :  { %v1164_v23 = vsub.f32 1.5, %v1163_v22 }
 0x13c   :  { %v1165_v24 = vmul.f32 %v2133_v17, %v1164_v23 }
 0x13e   :  { %v1166_v26 = vmul.f32 %v1165_v24, %v1123_v12 }
 0x140   :  { %v1168_v29 = vsel %vm1167_vm8, %v1123_v12, %v1166_v26 }
 0x141   :  { %v1171_v31 = vsel %vm1169_vm10, %v1170_v28, %v1168_v29 }
 0x142   :  { %v1173_v32 = vpack.c.bf16 %v1171_v31, %v1147_v30 }
 0x144   :  { %1324 = vmatmul.bf16.vlgmr.msra.gmra.mxu1 %v1173_v32 }
 0x1a1   :  { %v1311_v33 = vpop.f32.mrf.mxu0 }
 0x1a9   :  { %v1313_v39 = vpop.f32.mrf.mxu0 }
 0x1c1   :  { %v1325_v36 = vpop.f32.mrf.mxu1 }
 0x1c2   :  { %v1326_v37 = vadd.f32 %v1325_v36, %v1311_v33 }
 0x1c4   :  { %v1330_v38 = vmax.f32 %v1326_v37, 1e-06 }
 0x1c6   :  { %2134 = vlog2.f32 %v1330_v38 }
 0x1c9   :  { %v1327_v40 = vpop.f32.mrf.mxu1 }
 0x1ca   :  { %v1328_v41 = vadd.f32 %v1327_v40, %v1313_v39 }
 0x1cc   :  { %v2135_v42 = vpop.eup %2134  ;;  %v1331_v43 = vmax.f32 %v1328_v41, 1e-06 }
 0x1cd   :  { %v1333_v44 = vmul.f32 0.6931472, %v2135_v42 }
 0x1ce   :  { %2136 = vlog2.f32 %v1331_v43 }
 0x1cf   :  { %v1336_v47 = vmul.f32 0.4342945, %v1333_v44 }
 0x1d1   :  { %1338 = vxpose.xlu0.b32.start [1/2] (short) %v1336_v47, 128 }
 0x1d4   :  { %v2137_v45 = vpop.eup %2136 }
 0x1d5   :  { %v1335_v46 = vmul.f32 0.6931472, %v2137_v45 }
 0x1d7   :  { %v1337_v34 = vmul.f32 0.4342945, %v1335_v46 }
 0x1d9   :  { %1339 = vxpose.xlu0.b32.end [2/2] (short) %v1337_v34, 128 }
 0x275   :  { %v1354_v48 = vpop.trf.xlu0 }
 0x276   :  { %1371 = vst.msk [vmem:[%s2416_s4] sm:$0xff] %vm1370_vm11, %v1354_v48 }
 0x27d   :  { %v1355_v50 = vpop.trf.xlu0 }
 0x27e   :  { %1372 = vst.msk [vmem:[%s2416_s4 + $0x8] sm:$0xff] %vm1370_vm11, %v1355_v50 }
 0x285   :  { %v1356_v54 = vpop.trf.xlu0 }
 0x286   :  { %1373 = vst.msk [vmem:[%s2416_s4 + $0x10] sm:$0xff] %vm1370_vm11, %v1356_v54 }
 0x28d   :  { %v1357_v55 = vpop.trf.xlu0 }
 0x28e   :  { %1374 = vst.msk [vmem:[%s2416_s4 + $0x18] sm:$0xff] %vm1370_vm11, %v1357_v55 }
 0x295   :  { %v1358_v19 = vpop.trf.xlu0 }
 0x296   :  { %1375 = vst.msk [vmem:[%s2416_s4 + $0x20] sm:$0xff] %vm1370_vm11, %v1358_v19 }
 0x29d   :  { %v1359_v56 = vpop.trf.xlu0 }
 0x29e   :  { %1376 = vst.msk [vmem:[%s2416_s4 + $0x28] sm:$0xff] %vm1370_vm11, %v1359_v56 }
 0x2a5   :  { %v1360_v57 = vpop.trf.xlu0 }
 0x2a6   :  { %1377 = vst.msk [vmem:[%s2416_s4 + $0x30] sm:$0xff] %vm1370_vm11, %v1360_v57 }
 0x2ad   :  { %v1361_v58 = vpop.trf.xlu0 }
 0x2ae   :  { %1378 = vst.msk [vmem:[%s2416_s4 + $0x38] sm:$0xff] %vm1370_vm11, %v1361_v58 }
 0x2b5   :  { %v1362_v59 = vpop.trf.xlu0 }
 0x2b6   :  { %1379 = vst.msk [vmem:[%s2416_s4 + $0x40] sm:$0xff] %vm1370_vm11, %v1362_v59 }
 0x2bd   :  { %v1363_v51 = vpop.trf.xlu0 }
 0x2be   :  { %1380 = vst.msk [vmem:[%s2416_s4 + $0x48] sm:$0xff] %vm1370_vm11, %v1363_v51 }
 0x2c5   :  { %v1364_v60 = vpop.trf.xlu0 }
 0x2c6   :  { %1381 = vst.msk [vmem:[%s2416_s4 + $0x50] sm:$0xff] %vm1370_vm11, %v1364_v60 }
 0x2cd   :  { %v1365_v35 = vpop.trf.xlu0 }
 0x2ce   :  { %1382 = vst.msk [vmem:[%s2416_s4 + $0x58] sm:$0xff] %vm1370_vm11, %v1365_v35 }
 0x2d5   :  { %v1366_v49 = vpop.trf.xlu0 }
 0x2d6   :  { %1383 = vst.msk [vmem:[%s2416_s4 + $0x60] sm:$0xff] %vm1370_vm11, %v1366_v49 }
 0x2dd   :  { %v1367_v61 = vpop.trf.xlu0 }
 0x2de   :  { %1384 = vst.msk [vmem:[%s2416_s4 + $0x68] sm:$0xff] %vm1370_vm11, %v1367_v61 }
 0x2e5   :  { %v1368_v62 = vpop.trf.xlu0 }
 0x2e6   :  { %1385 = vst.msk [vmem:[%s2416_s4 + $0x70] sm:$0xff] %vm1370_vm11, %v1368_v62 }
 0x2ed   :  { %v1369_v63 = vpop.trf.xlu0 }
 0x2ee   :  { %1386 = vst.msk [vmem:[%s2416_s4 + $0x78] sm:$0xff] %vm1370_vm11, %v1369_v63 }
 0x2ef   :  { %1391 = vsyncpa [#allocation3], 1 }
 0x2f0   :  { %1392 = vsyncpa [#allocation5], 1 }
 0x2f1   :  { %1393 = vsyncpa [#allocation8], 1 }

</bundles_post_ra>
